<compile_context>
chip_gen: v7x
topology: tpu7x:2x2x1
jax: 0.10.0
libtpu: 0.0.40
codegen_flags: <defaults>
</compile_context>

<pallas_src>
import jax
import jax.numpy as jnp
from jax.experimental import pallas as pl
from jax.experimental.pallas import tpu as pltpu


# ---------------------------------------------------------------------------
# Kernels
# ---------------------------------------------------------------------------
def _complex_linear_kernel_f32out(xr_ref, xi_ref, wr_ref, wi_ref, br_ref, bi_ref,
                                  yr_ref, yi_ref):
    """f32 outputs: accumulate directly into the resident output blocks."""
    k = pl.program_id(2)

    @pl.when(k == 0)
    def _init():
        yr_ref[...] = jnp.zeros_like(yr_ref)
        yi_ref[...] = jnp.zeros_like(yi_ref)

    xr = xr_ref[...]
    xi = xi_ref[...]
    wr = wr_ref[...]
    wi = wi_ref[...]
    # Module's exact sign convention:
    #   y_real = xr@wr - xi@wi ; y_imag = xr@wi - xi@wr
    yr_ref[...] += (jnp.dot(xr, wr, preferred_element_type=jnp.float32)
                    - jnp.dot(xi, wi, preferred_element_type=jnp.float32))
    yi_ref[...] += (jnp.dot(xr, wi, preferred_element_type=jnp.float32)
                    - jnp.dot(xi, wr, preferred_element_type=jnp.float32))

    @pl.when(k == pl.num_programs(2) - 1)
    def _finalize():
        # Bias added once per output tile, off the reduction loop's hot path.
        yr_ref[...] += br_ref[...]   # (tm, tn) += (1, tn) broadcast
        yi_ref[...] += bi_ref[...]


def _complex_linear_kernel_acc(xr_ref, xi_ref, wr_ref, wi_ref, br_ref, bi_ref,
                               yr_ref, yi_ref, accr_ref, acci_ref):
    """Non-f32 outputs: f32 VMEM scratch accumulators, cast on finalize."""
    k = pl.program_id(2)

    @pl.when(k == 0)
    def _init():
        accr_ref[...] = jnp.zeros_like(accr_ref)
        acci_ref[...] = jnp.zeros_like(acci_ref)

    xr = xr_ref[...]
    xi = xi_ref[...]
    wr = wr_ref[...]
    wi = wi_ref[...]
    accr_ref[...] += (jnp.dot(xr, wr, preferred_element_type=jnp.float32)
                      - jnp.dot(xi, wi, preferred_element_type=jnp.float32))
    acci_ref[...] += (jnp.dot(xr, wi, preferred_element_type=jnp.float32)
                      - jnp.dot(xi, wr, preferred_element_type=jnp.float32))

    @pl.when(k == pl.num_programs(2) - 1)
    def _finalize():
        yr_ref[...] = (accr_ref[...] + br_ref[...]).astype(yr_ref.dtype)
        yi_ref[...] = (acci_ref[...] + bi_ref[...]).astype(yi_ref.dtype)


# ---------------------------------------------------------------------------
# Tiling helpers
# ---------------------------------------------------------------------------
def _round_up(x, m):
    return ((x + m - 1) // m) * m


def _plan_dim(d, max_tile):
    """Return (tile, padded_extent).

    Small dims (<= max_tile) get a single full-extent block (always a legal
    block shape, tiny VMEM). Large dims get an MXU-aligned tile of `max_tile`
    (callers pass multiples of 8/128/256) with zero-padding to a full grid, so
    no partial/misaligned tile and no full-extent VMEM blowup."""
    if d <= max_tile:
        return d, d
    return max_tile, _round_up(d, max_tile)


# ---------------------------------------------------------------------------
# Wrapper
# ---------------------------------------------------------------------------
def complex_linear(x_real, x_imag, w_real, w_imag, b_real, b_imag,
                   *, tm=256, tn=512, tk=512,
                   compute_dtype=jnp.bfloat16, out_dtype=None):
    """Pallas ComplexLinear forward. Returns (y_real, y_imag), each (B, N).

    compute_dtype: dtype of the MXU operands (default bfloat16 for native MXU
    rate on all generations); accumulation is always float32.
    tm/tn/tk: maximum tile sizes (keep tm a multiple of 8 and tn/tk multiples
    of 128/256); small dims collapse to a single full-extent block.
    """
    B, K = x_real.shape
    Kw, N = w_real.shape
    assert K == Kw, "in_features mismatch between x and w"
    if out_dtype is None:
        out_dtype = x_real.dtype

    tile_m, Mp = _plan_dim(B, tm)
    tile_n, Np = _plan_dim(N, tn)
    tile_k, Kp = _plan_dim(K, tk)

    # Zero padding (only when a dim exceeds its max tile and is not divisible).
    # Zeros are inert for the K reduction; padded M/N rows/cols are sliced off.
    if Mp != B or Kp != K:
        x_real = jnp.pad(x_real, ((0, Mp - B), (0, Kp - K)))
        x_imag = jnp.pad(x_imag, ((0, Mp - B), (0, Kp - K)))
    if Kp != K or Np != N:
        w_real = jnp.pad(w_real, ((0, Kp - K), (0, Np - N)))
        w_imag = jnp.pad(w_imag, ((0, Kp - K), (0, Np - N)))
    if Np != N:
        b_real = jnp.pad(b_real, (0, Np - N))
        b_imag = jnp.pad(b_imag, (0, Np - N))

    # MXU operands in compute_dtype (bf16 by default); biases stay f32.
    xr = x_real.astype(compute_dtype)
    xi = x_imag.astype(compute_dtype)
    wr = w_real.astype(compute_dtype)
    wi = w_imag.astype(compute_dtype)
    br = b_real.reshape(1, Np).astype(jnp.float32)
    bi = b_imag.reshape(1, Np).astype(jnp.float32)

    grid = (Mp // tile_m, Np // tile_n, Kp // tile_k)

    in_specs = [
        pl.BlockSpec((tile_m, tile_k), lambda i, j, k: (i, k)),   # x_real
        pl.BlockSpec((tile_m, tile_k), lambda i, j, k: (i, k)),   # x_imag
        pl.BlockSpec((tile_k, tile_n), lambda i, j, k: (k, j)),   # w_real
        pl.BlockSpec((tile_k, tile_n), lambda i, j, k: (k, j)),   # w_imag
        pl.BlockSpec((1, tile_n), lambda i, j, k: (0, j)),        # b_real
        pl.BlockSpec((1, tile_n), lambda i, j, k: (0, j)),        # b_imag
    ]
    out_specs = [
        pl.BlockSpec((tile_m, tile_n), lambda i, j, k: (i, j)),   # y_real
        pl.BlockSpec((tile_m, tile_n), lambda i, j, k: (i, j)),   # y_imag
    ]
    out_shape = (jax.ShapeDtypeStruct((Mp, Np), out_dtype),
                 jax.ShapeDtypeStruct((Mp, Np), out_dtype))

    if out_dtype == jnp.float32:
        kernel = _complex_linear_kernel_f32out
        scratch_shapes = []
    else:
        kernel = _complex_linear_kernel_acc
        scratch_shapes = [pltpu.VMEM((tile_m, tile_n), jnp.float32),
                          pltpu.VMEM((tile_m, tile_n), jnp.float32)]

    comp_bytes = jnp.dtype(compute_dtype).itemsize
    out_bytes = jnp.dtype(out_dtype).itemsize
    cost = pl.CostEstimate(
        flops=8 * Mp * Kp * Np,                      # 4 matmuls, 2*M*K*N each
        transcendentals=0,
        bytes_accessed=(2 * Mp * Kp * comp_bytes     # x_real + x_imag
                        + 2 * Kp * Np * comp_bytes   # w_real + w_imag
                        + 2 * Np * 4                 # biases
                        + 2 * Mp * Np * out_bytes),  # y_real + y_imag
    )

    y_real, y_imag = pl.pallas_call(
        kernel,
        out_shape=out_shape,
        grid_spec=pltpu.PrefetchScalarGridSpec(
            num_scalar_prefetch=0,
            grid=grid,
            in_specs=in_specs,
            out_specs=out_specs,
            scratch_shapes=scratch_shapes,
        ),
        compiler_params=pltpu.CompilerParams(
            dimension_semantics=("parallel", "parallel", "arbitrary"),
        ),
        cost_estimate=cost,
    )(xr, xi, wr, wi, br, bi)

    if Mp != B or Np != N:
        y_real = y_real[:B, :N]
        y_imag = y_imag[:B, :N]
    return y_real, y_imag


if __name__ == "__main__":
    # Small shapes consistent with the module's forward.
    B = 8
    in_features = 32
    out_features = 16

    key = jax.random.PRNGKey(0)
    k_xr, k_xi, k_wr, k_wi, k_br, k_bi = jax.random.split(key, 6)

    x_real = jax.random.normal(k_xr, (B, in_features), dtype=jnp.float32)
    x_imag = jax.random.normal(k_xi, (B, in_features), dtype=jnp.float32)

    # Parameters ~ N(0,1), matching torch.nn.init.normal_.
    w_real = jax.random.normal(k_wr, (in_features, out_features), dtype=jnp.float32)
    w_imag = jax.random.normal(k_wi, (in_features, out_features), dtype=jnp.float32)
    b_real = jax.random.normal(k_br, (out_features,), dtype=jnp.float32)
    b_imag = jax.random.normal(k_bi, (out_features,), dtype=jnp.float32)

    # --- Exact-precision path (f32 MXU operands) vs. pure f32 reference. ---
    y_real_f32, y_imag_f32 = complex_linear(
        x_real, x_imag, w_real, w_imag, b_real, b_imag,
        compute_dtype=jnp.float32)
    jax.block_until_ready((y_real_f32, y_imag_f32))

    ref_real = x_real @ w_real - x_imag @ w_imag + b_real[None, :]
    ref_imag = x_real @ w_imag - x_imag @ w_real + b_imag[None, :]
    assert jnp.allclose(y_real_f32, ref_real, atol=1e-4, rtol=1e-5), "f32 y_real mismatch"
    assert jnp.allclose(y_imag_f32, ref_imag, atol=1e-4, rtol=1e-5), "f32 y_imag mismatch"

    # --- Default fast path (bf16 MXU operands, f32 accumulate). ---
    y_real_bf, y_imag_bf = complex_linear(
        x_real, x_imag, w_real, w_imag, b_real, b_imag)
    jax.block_until_ready((y_real_bf, y_imag_bf))

    def _bdot(a, b):
        return jnp.dot(a.astype(jnp.bfloat16), b.astype(jnp.bfloat16),
                       preferred_element_type=jnp.float32)

    ref_real_bf = _bdot(x_real, w_real) - _bdot(x_imag, w_imag) + b_real[None, :]
    ref_imag_bf = _bdot(x_real, w_imag) - _bdot(x_imag, w_real) + b_imag[None, :]
    assert jnp.allclose(y_real_bf, ref_real_bf, atol=1e-2, rtol=1e-2), "bf16 y_real mismatch"
    assert jnp.allclose(y_imag_bf, ref_imag_bf, atol=1e-2, rtol=1e-2), "bf16 y_imag mismatch"

    print("KERNEL_OK")
</pallas_src>

<mosaic_0001>
module attributes {stable_mosaic.version = 11 : i64} {
  func.func @_complex_linear_kernel_f32out(%arg0: i32, %arg1: i32, %arg2: i32, %arg3: memref<8x32xf32, #tpu.memory_space<vmem>>, %arg4: memref<8x32xf32, #tpu.memory_space<vmem>>, %arg5: memref<32x16xf32, #tpu.memory_space<vmem>>, %arg6: memref<32x16xf32, #tpu.memory_space<vmem>>, %arg7: memref<1x16xf32, #tpu.memory_space<vmem>>, %arg8: memref<1x16xf32, #tpu.memory_space<vmem>>, %arg9: memref<8x16xf32, #tpu.memory_space<vmem>>, %arg10: memref<8x16xf32, #tpu.memory_space<vmem>>) attributes {dimension_semantics = [#tpu.dimension_semantics<parallel>, #tpu.dimension_semantics<parallel>, #tpu.dimension_semantics<arbitrary>], iteration_bounds = array<i64: 1, 1, 1>, scalar_prefetch = 0 : i64, scratch_operands = 0 : i64, tpu.core_type = #tpu.core_type<tc>, window_params = [{transform_indices = @transform_0, window_bounds = array<i64: 8, 32>}, {transform_indices = @transform_1, window_bounds = array<i64: 8, 32>}, {transform_indices = @transform_2, window_bounds = array<i64: 32, 16>}, {transform_indices = @transform_3, window_bounds = array<i64: 32, 16>}, {transform_indices = @transform_4, window_bounds = array<i64: 1, 16>}, {transform_indices = @transform_5, window_bounds = array<i64: 1, 16>}, {transform_indices = @transform_6, window_bounds = array<i64: 8, 16>}, {transform_indices = @transform_7, window_bounds = array<i64: 8, 16>}]} {
    %c0_i32 = arith.constant 0 : i32
    %0 = arith.cmpi eq, %arg2, %c0_i32 : i32
    %1 = arith.extui %0 : i1 to i32
    %c0_i32_0 = arith.constant 0 : i32
    %2 = arith.cmpi ne, %1, %c0_i32_0 : i32
    scf.if %2 {
      %cst_21 = arith.constant 0.000000e+00 : f32
      %22 = vector.broadcast %cst_21 : f32 to vector<8x16xf32>
      %c0_22 = arith.constant 0 : index
      %c0_23 = arith.constant 0 : index
      %23 = vector.load %arg9[%c0_22, %c0_23] : memref<8x16xf32, #tpu.memory_space<vmem>>, vector<8x16xf32>
      tpu.vector_store %arg9[%c0_22, %c0_23], %22 {strides = array<i32>} : memref<8x16xf32, #tpu.memory_space<vmem>>, vector<8x16xf32>,
      %cst_24 = arith.constant 0.000000e+00 : f32
      %24 = vector.broadcast %cst_24 : f32 to vector<8x16xf32>
      %c0_25 = arith.constant 0 : index
      %c0_26 = arith.constant 0 : index
      %25 = vector.load %arg10[%c0_25, %c0_26] : memref<8x16xf32, #tpu.memory_space<vmem>>, vector<8x16xf32>
      tpu.vector_store %arg10[%c0_25, %c0_26], %24 {strides = array<i32>} : memref<8x16xf32, #tpu.memory_space<vmem>>, vector<8x16xf32>,
    } else {
    }
    %c0 = arith.constant 0 : index
    %c0_1 = arith.constant 0 : index
    %3 = vector.load %arg3[%c0, %c0_1] : memref<8x32xf32, #tpu.memory_space<vmem>>, vector<8x32xf32>
    %c0_2 = arith.constant 0 : index
    %c0_3 = arith.constant 0 : index
    %4 = vector.load %arg4[%c0_2, %c0_3] : memref<8x32xf32, #tpu.memory_space<vmem>>, vector<8x32xf32>
    %c0_4 = arith.constant 0 : index
    %c0_5 = arith.constant 0 : index
    %5 = vector.load %arg5[%c0_4, %c0_5] : memref<32x16xf32, #tpu.memory_space<vmem>>, vector<32x16xf32>
    %c0_6 = arith.constant 0 : index
    %c0_7 = arith.constant 0 : index
    %6 = vector.load %arg6[%c0_6, %c0_7] : memref<32x16xf32, #tpu.memory_space<vmem>>, vector<32x16xf32>
    %c0_8 = arith.constant 0 : index
    %c0_9 = arith.constant 0 : index
    %7 = vector.load %arg9[%c0_8, %c0_9] : memref<8x16xf32, #tpu.memory_space<vmem>>, vector<8x16xf32>
    %cst = arith.constant dense<0.000000e+00> : vector<8x16xf32>
    %8 = tpu.matmul %3, %5, %cst {dimension_numbers = #tpu.dot_dimension_numbers<[1], [0], [0], [1], [0, 0, 1, 1], [], []>} : vector<8x32xf32>, vector<32x16xf32>, vector<8x16xf32> -> vector<8x16xf32>
    %cst_10 = arith.constant dense<0.000000e+00> : vector<8x16xf32>
    %9 = tpu.matmul %4, %6, %cst_10 {dimension_numbers = #tpu.dot_dimension_numbers<[1], [0], [0], [1], [0, 0, 1, 1], [], []>} : vector<8x32xf32>, vector<32x16xf32>, vector<8x16xf32> -> vector<8x16xf32>
    %10 = arith.subf %8, %9 : vector<8x16xf32>
    %11 = arith.addf %7, %10 : vector<8x16xf32>
    %c0_11 = arith.constant 0 : index
    %c0_12 = arith.constant 0 : index
    %12 = vector.load %arg9[%c0_11, %c0_12] : memref<8x16xf32, #tpu.memory_space<vmem>>, vector<8x16xf32>
    tpu.vector_store %arg9[%c0_11, %c0_12], %11 {strides = array<i32>} : memref<8x16xf32, #tpu.memory_space<vmem>>, vector<8x16xf32>,
    %c0_13 = arith.constant 0 : index
    %c0_14 = arith.constant 0 : index
    %13 = vector.load %arg10[%c0_13, %c0_14] : memref<8x16xf32, #tpu.memory_space<vmem>>, vector<8x16xf32>
    %cst_15 = arith.constant dense<0.000000e+00> : vector<8x16xf32>
    %14 = tpu.matmul %3, %6, %cst_15 {dimension_numbers = #tpu.dot_dimension_numbers<[1], [0], [0], [1], [0, 0, 1, 1], [], []>} : vector<8x32xf32>, vector<32x16xf32>, vector<8x16xf32> -> vector<8x16xf32>
    %cst_16 = arith.constant dense<0.000000e+00> : vector<8x16xf32>
    %15 = tpu.matmul %4, %5, %cst_16 {dimension_numbers = #tpu.dot_dimension_numbers<[1], [0], [0], [1], [0, 0, 1, 1], [], []>} : vector<8x32xf32>, vector<32x16xf32>, vector<8x16xf32> -> vector<8x16xf32>
    %16 = arith.subf %14, %15 : vector<8x16xf32>
    %17 = arith.addf %13, %16 : vector<8x16xf32>
    %c0_17 = arith.constant 0 : index
    %c0_18 = arith.constant 0 : index
    %18 = vector.load %arg10[%c0_17, %c0_18] : memref<8x16xf32, #tpu.memory_space<vmem>>, vector<8x16xf32>
    tpu.vector_store %arg10[%c0_17, %c0_18], %17 {strides = array<i32>} : memref<8x16xf32, #tpu.memory_space<vmem>>, vector<8x16xf32>,
    %c0_i32_19 = arith.constant 0 : i32
    %19 = arith.cmpi eq, %arg2, %c0_i32_19 : i32
    %20 = arith.extui %19 : i1 to i32
    %c0_i32_20 = arith.constant 0 : i32
    %21 = arith.cmpi ne, %20, %c0_i32_20 : i32
    scf.if %21 {
      %c0_21 = arith.constant 0 : index
      %c0_22 = arith.constant 0 : index
      %22 = vector.load %arg9[%c0_21, %c0_22] : memref<8x16xf32, #tpu.memory_space<vmem>>, vector<8x16xf32>
      %c0_23 = arith.constant 0 : index
      %c0_24 = arith.constant 0 : index
      %23 = vector.load %arg7[%c0_23, %c0_24] : memref<1x16xf32, #tpu.memory_space<vmem>>, vector<1x16xf32>
      %24 = vector.broadcast %23 : vector<1x16xf32> to vector<8x16xf32>
      %25 = arith.addf %22, %24 : vector<8x16xf32>
      %c0_25 = arith.constant 0 : index
      %c0_26 = arith.constant 0 : index
      %26 = vector.load %arg9[%c0_25, %c0_26] : memref<8x16xf32, #tpu.memory_space<vmem>>, vector<8x16xf32>
      tpu.vector_store %arg9[%c0_25, %c0_26], %25 {strides = array<i32>} : memref<8x16xf32, #tpu.memory_space<vmem>>, vector<8x16xf32>,
      %c0_27 = arith.constant 0 : index
      %c0_28 = arith.constant 0 : index
      %27 = vector.load %arg10[%c0_27, %c0_28] : memref<8x16xf32, #tpu.memory_space<vmem>>, vector<8x16xf32>
      %c0_29 = arith.constant 0 : index
      %c0_30 = arith.constant 0 : index
      %28 = vector.load %arg8[%c0_29, %c0_30] : memref<1x16xf32, #tpu.memory_space<vmem>>, vector<1x16xf32>
      %29 = vector.broadcast %28 : vector<1x16xf32> to vector<8x16xf32>
      %30 = arith.addf %27, %29 : vector<8x16xf32>
      %c0_31 = arith.constant 0 : index
      %c0_32 = arith.constant 0 : index
      %31 = vector.load %arg10[%c0_31, %c0_32] : memref<8x16xf32, #tpu.memory_space<vmem>>, vector<8x16xf32>
      tpu.vector_store %arg10[%c0_31, %c0_32], %30 {strides = array<i32>} : memref<8x16xf32, #tpu.memory_space<vmem>>, vector<8x16xf32>,
    } else {
    }
    return
  }
  func.func @transform_0(%arg0: i32, %arg1: i32, %arg2: i32) -> (i32, i32) {
    %c0_i32 = arith.constant 0 : i32
    return %arg0, %arg2 : i32, i32
  }
  func.func @transform_1(%arg0: i32, %arg1: i32, %arg2: i32) -> (i32, i32) {
    %c0_i32 = arith.constant 0 : i32
    return %arg0, %arg2 : i32, i32
  }
  func.func @transform_2(%arg0: i32, %arg1: i32, %arg2: i32) -> (i32, i32) {
    %c0_i32 = arith.constant 0 : i32
    return %arg2, %arg1 : i32, i32
  }
  func.func @transform_3(%arg0: i32, %arg1: i32, %arg2: i32) -> (i32, i32) {
    %c0_i32 = arith.constant 0 : i32
    return %arg2, %arg1 : i32, i32
  }
  func.func @transform_4(%arg0: i32, %arg1: i32, %arg2: i32) -> (i32, i32) {
    %c0_i32 = arith.constant 0 : i32
    %c0_i32_0 = arith.constant 0 : i32
    return %c0_i32, %arg1 : i32, i32
  }
  func.func @transform_5(%arg0: i32, %arg1: i32, %arg2: i32) -> (i32, i32) {
    %c0_i32 = arith.constant 0 : i32
    %c0_i32_0 = arith.constant 0 : i32
    return %c0_i32, %arg1 : i32, i32
  }
  func.func @transform_6(%arg0: i32, %arg1: i32, %arg2: i32) -> (i32, i32) {
    %c0_i32 = arith.constant 0 : i32
    return %arg0, %arg1 : i32, i32
  }
  func.func @transform_7(%arg0: i32, %arg1: i32, %arg2: i32) -> (i32, i32) {
    %c0_i32 = arith.constant 0 : i32
    return %arg0, %arg1 : i32, i32
  }
}

</mosaic_0001>

<bundles_post_ra>
// kernel: tpu_custom_call.1
= control target key start
LH: loop header
LB: loop body
LE: loop exit
PB: predicated region body
PF: predicated region fallthrough
CT: control target
= control target key end

     0   :  { %13 = vsyncpa [#allocation3], 0  ;;  %v538_v3 = vmov 0.0|0.0   ;;  %vm539_vm0 = vmmov 0   ;;  %v540_v11 = vmov 0.0   ;;  %s657_s0 = inlined_call_operand.vmem [shape: f32[8,32], index: 0, kind: input, shape index: {}]   ;;  %s658_s1 = inlined_call_operand.vmem [shape: f32[8,32], index: 1, kind: input, shape index: {}]   ;;  %s659_s2 = inlined_call_operand.vmem [shape: f32[32,16], index: 2, kind: input, shape index: {}]   ;;  %s660_s3 = inlined_call_operand.vmem [shape: f32[32,16], index: 3, kind: input, shape index: {}]   ;;  %s661_s4 = inlined_call_operand.vmem [shape: f32[1,16], index: 4, kind: input, shape index: {}]   ;;  %s662_s5 = inlined_call_operand.vmem [shape: f32[1,16], index: 5, kind: input, shape index: {}]   ;;  %s663_s6 = inlined_call_operand.hbm [shape: f32[8,16], index: 6, kind: output, shape index: {0}]   ;;  %s664_s7 = inlined_call_operand.hbm [shape: f32[8,16], index: 7, kind: output, shape index: {1}]  }
   0x1   :  { %v36_v0 = vld [vmem:[%s659_s2] sm:$0xff]  ;;  %v37_v1 = vld [vmem:[%s659_s2 + $0x8] sm:$0xff]  ;;  %461 = vmatprep.subr.bf16.mxu0 %v538_v3  ;;  %467 = vmatprep.subr.bf16.mxu1 %v538_v3  ;;  %v38_v6 = vld [vmem:[%s659_s2 + $0x10] sm:$0xff] }
   0x2   :  { %v40_v2 = vld [vmem:[%s660_s3] sm:$0xff]  ;;  %v462_v4 = vpack.c.bf16 %v37_v1, %v36_v0  ;;  %v41_v5 = vld [vmem:[%s660_s3 + $0x8] sm:$0xff]  ;;  %v39_v7 = vld [vmem:[%s659_s2 + $0x18] sm:$0xff]  ;;  %425 = vmatprep.mubr.msk.f32.mxu0 %vm539_vm0, %v540_v11  ;;  %436 = vmatprep.mubr.msk.f32.mxu1 %vm539_vm0, %v540_v11 }
   0x3   :  { %v468_v8 = vpack.c.bf16 %v41_v5, %v40_v2  ;;  %v42_v9 = vld [vmem:[%s660_s3 + $0x10] sm:$0xff]  ;;  %v43_v10 = vld [vmem:[%s660_s3 + $0x18] sm:$0xff]  ;;  %v465_v12 = vpack.c.bf16 %v39_v7, %v38_v6 }
   0x4   :  { %463 = vmatpush3.bf16.msra.mxu0 %v462_v4 }
   0x5   :  { %14 = vsyncpa [#allocation5], 0  ;;  %469 = vmatpush3.bf16.msra.mxu1 %v468_v8  ;;  %464 = vmatprep.subr.bf16.mxu0 %v538_v3  ;;  %v471_v13 = vpack.c.bf16 %v43_v10, %v42_v9  ;;  %v34_v14 = vld [vmem:[%s657_s0] sm:$0xff]  ;;  %vm45_vm1 = vcmask 261120   ;;  %vm31_vm2 = vcmask 130048   ;;  %s541_s19 = smov [#allocation2]  }
   0x6   :  { %470 = vmatprep.subr.bf16.mxu1 %v538_v3  ;;  %v35_v15 = vld [vmem:[%s658_s1] sm:$0xff]  ;;  %32 = vst.msk [vmem:[#allocation2] sm:$0xff] %vm31_vm2, %v540_v11  ;;  %33 = vst.msk [vmem:[#allocation4] sm:$0xff] %vm31_vm2, %v540_v11  ;;  %s369_s20 = sshll.u32 %s541_s19, 4  ;;  %s370_s20 = int_to_ptr.vmem [resolvable:$true] %s369_s20 }
   0x7   :  { %v395_v29 = vld [vmem:[%s661_s4] ss:$0 sm:$0xff]  ;;  %s490_s21 = scalar_lea.vmem %s370_s20, 128  ;;  %p495_p1 = scmp.lt.s32.totalorder %s370_s20, %s370_s20 }
   0x8   :  { %466 = vmatpush3.bf16.msra.mxu0 %v465_v12  ;;  %p491_p0 = scmp.ne.s32.totalorder %s370_s20, %s490_s21  ;;  %p496_p2 = scmp.lt.s32.totalorder %s490_s21, %s490_s21 }
   0x9   :  { %472 = vmatpush3.bf16.msra.mxu1 %v471_v13  ;;  %473 = vmatprep.subr.bf16.mxu0 %v538_v3 }
   0xa   :  { %479 = vmatprep.subr.bf16.mxu1 %v538_v3  ;;  %p497_p3 = por %p496_p2, %p495_p1 }
   0xb   :  { %426 = vmatmul.mubr.msk.f32.vlgmr.msra.gmra.mrb[0].mxu0 %vm45_vm1, %v34_v14 }
   0xc   :  { %437 = vmatmul.mubr.msk.f32.vlgmr.msra.gmra.mrb[0].mxu1 %vm45_vm1, %v35_v15  ;;  %475 = vmatpush3.bf16.msra.mxu0 %v468_v8  ;;  %p498_p4 = pnand %p497_p3, %p491_p0 }
   0xd   :  { %481 = vmatpush3.bf16.msra.mxu1 %v462_v4  ;;  %476 = vmatprep.subr.bf16.mxu0 %v538_v3  ;;  %v44_v17 = vld [vmem:[#allocation2] sm:$0xff]  ;;  %v196_v24 = vld [vmem:[#allocation4] sm:$0xff] }
   0xe   :  { %482 = vmatprep.subr.bf16.mxu1 %v538_v3  ;;  %447 = vmatprep.mubr.msk.f32.mxu0 %vm539_vm0, %v540_v11 }
   0xf   :  { %458 = vmatprep.mubr.msk.f32.mxu1 %vm539_vm0, %v540_v11 }
  0x10   :  { %478 = vmatpush3.bf16.msra.mxu0 %v471_v13 }
  0x11   :  { %484 = vmatpush3.bf16.msra.mxu1 %v465_v12 }
  0x13   :  { %448 = vmatmul.mubr.msk.f32.vlgmr.msra.gmra.mrb[2].mxu0 %vm45_vm1, %v34_v14 }
  0x14   :  { %459 = vmatmul.mubr.msk.f32.vlgmr.msra.gmra.mrb[2].mxu1 %vm45_vm1, %v35_v15 }
  0xde   :  { %v115_v16 = vpop.f32.mrb[0].mxu0 }
  0xdf   :  { %v188_v18 = vpop.f32.mrb[0].mxu1  ;;  %v427_v19 = vpop.f32.mrb[1].mxu0 }
  0xe0   :  { %v192_v20 = vsub.f32 %v115_v16, %v188_v18  ;;  %v438_v21 = vpop.f32.mrb[1].mxu1 }
  0xe2   :  { %v193_v22 = vadd.f32 %v192_v20, %v44_v17 }
  0xe4   :  { %195 = vst.msk [vmem:[#allocation2] sm:$0xff] %vm31_vm2, %v193_v22 }
  0xe6   :  { %v263_v23 = vpop.f32.mrb[2].mxu0 }
  0xe7   :  { %v333_v25 = vpop.f32.mrb[2].mxu1  ;;  %v449_v26 = vpop.f32.mrb[3].mxu0 }
  0xe8   :  { %v337_v27 = vsub.f32 %v263_v23, %v333_v25  ;;  %v460_v28 = vpop.f32.mrb[3].mxu1 }
  0xea   :  { %v338_v30 = vadd.f32 %v337_v27, %v196_v24 }
  0xeb   :  { %v343_v31 = vld [vmem:[#allocation2] sm:$0xff] }
  0xec   :  { %339 = vst.msk [vmem:[#allocation4] sm:$0xff] %vm31_vm2, %v338_v30  ;;  %v351_v32 = vadd.f32 %v395_v29, %v343_v31 }
  0xee   :  { %352 = vst.msk [vmem:[#allocation2] sm:$0xff] %vm31_vm2, %v351_v32 }
  0xef   :  { %501 = shalt.err (!%p498_p4)
}
  0xf0   :  { %s502_s4 = scalar_lea.hbm %s663_s6, 128 }
  0xf1   :  { %p503_p5 = scmp.ne.s32.totalorder %s663_s6, %s502_s4  ;;  %p506_p6 = scmp.lt.u32.totalorder %s502_s4, %s663_s6 }
  0xf3   :  { %p508_p7 = pnand %p506_p6, %p503_p5 }
  0xf5   :  { %511 = shalt.err (!%p508_p7)
}
  0xf6   :  { %372 = dma.vmem_to_hbm [thread:$0]  %s370_s20, 128, %s663_s6, [#allocation3]   ;;  %v396_v33 = vld [vmem:[%s662_s5] ss:$0 sm:$0xff]  ;;  %v353_v34 = vld [vmem:[#allocation4] sm:$0xff] }
  0xf7   :  { %s542_s9 = smov [#allocation4]   ;;  %v361_v35 = vadd.f32 %v396_v33, %v353_v34 }
  0xf8   :  { %s379_s10 = sshll.u32 %s542_s9, 4  ;;  %s380_s10 = int_to_ptr.vmem [resolvable:$true] %s379_s10 }
  0xf9   :  { %362 = vst.msk [vmem:[#allocation4] sm:$0xff] %vm31_vm2, %v361_v35  ;;  %s512_s11 = scalar_lea.vmem %s380_s10, 128  ;;  %p517_p9 = scmp.lt.s32.totalorder %s380_s10, %s380_s10 }
  0xfa   :  { %p513_p8 = scmp.ne.s32.totalorder %s380_s10, %s512_s11  ;;  %p518_p10 = scmp.lt.s32.totalorder %s512_s11, %s512_s11 }
  0xfc   :  { %p519_p11 = por %p518_p10, %p517_p9 }
  0xfe   :  { %p520_p12 = pnand %p519_p11, %p513_p8 }
 0x100   :  { %523 = shalt.err (!%p520_p12)
}
 0x101   :  { %s524_s13 = scalar_lea.hbm %s664_s7, 128 }
 0x102   :  { %p525_p13 = scmp.ne.s32.totalorder %s664_s7, %s524_s13  ;;  %p528_p0 = scmp.lt.u32.totalorder %s524_s13, %s664_s7 }
 0x104   :  { %p530_p1 = pnand %p528_p0, %p525_p13 }
 0x106   :  { %533 = shalt.err (!%p530_p1)
}
 0x107   :  { %382 = dma.vmem_to_hbm [thread:$0]  %s380_s10, 128, %s664_s7, [#allocation5]  }
 0x108   :  { %534 = dma.done.wait [#allocation3], 128  }
 0x109   :  { %535 = vsyncadd [#allocation3], 4294967168 }
 0x10a   :  { %536 = dma.done.wait [#allocation5], 128  }
 0x10b   :  { %537 = vsyncadd [#allocation5], 4294967168 }
 0x10c   :  { %389 = vsyncpa [#allocation3], 1 }
 0x10d   :  { %390 = vsyncpa [#allocation5], 1 }

</bundles_post_ra>
